<compile_context>
chip_gen: v7x
topology: tpu7x:2x2x1
jax: 0.10.0
libtpu: 0.0.40
codegen_flags: <defaults>
</compile_context>

<pallas_src>
import jax
import jax.numpy as jnp
import numpy as np
from jax.experimental import pallas as pl
from jax.experimental.pallas import tpu as pltpu

# Problem sizes (cfg-equivalents): data_shape = (NX, NY), T frames, NCOIL coils.
B, T, NX, NY, NCOIL = 2, 2, 16, 16, 4
N2X, N2Y = 2 * NX, 2 * NY
K_SAMPLE_POINTS = 128
MU_MAX = NX * NY / K_SAMPLE_POINTS  # defined in __init__ but unused in forward


# ----------------------------------------------------------------------------
# Host-side precompute of the fused per-frame A^H A operator (constants only).
# ----------------------------------------------------------------------------
def build_dc_operators(csm_r, csm_i, ker_r, ker_i, norm=1.0):
    """Fuse toep_op into one complex (P, P) matrix per frame.

    Returns W of shape (T, 2P, 2P) in bf16 such that, with row-major
    vec() and the row-vector layout [Re(vec(x)) | Im(vec(x))]:
        [Re(vec(y)) | Im(vec(y))] = [Re(vec(x)) | Im(vec(x))] @ W[t]
    where y = toep_op(x) for frame t.
    """
    csm = np.asarray(csm_r, np.float64) + 1j * np.asarray(csm_i, np.float64)
    ker = np.asarray(ker_r, np.float64) + 1j * np.asarray(ker_i, np.float64)
    nc, nx, ny = csm.shape
    t = ker.shape[0]
    p = nx * ny

    def dft(n):
        j = np.arange(n)
        return np.exp(-2j * np.pi * np.outer(j, j) / n)

    f2x, f2y = dft(2 * nx), dft(2 * ny)
    fl = f2x[:, :nx]                       # (2Nx, Nx)  zero-pad + row-DFT
    fr = f2y[:ny, :]                       # (Ny, 2Ny)  zero-pad + col-DFT
    gl = np.conj(f2x)[:nx, :] / (2 * nx)   # (Nx, 2Nx)  row-IDFT + crop
    gr = np.conj(f2y)[:, :ny] / (2 * ny)   # (2Ny, Ny)  col-IDFT + crop

    # Row-major vec identity: vec(A @ X @ B) = kron(A, B.T) @ vec(X)
    f_big = np.kron(fl, fr.T)              # (4P, P) : image -> padded k-space
    g_big = np.kron(gl, gr.T)              # (P, 4P) : padded k-space -> image
    s = csm.reshape(nc, p)
    gram = np.einsum('cp,cq->pq', np.conj(s), s)   # sum_c conj(csm_c) csm_c^T

    w = np.empty((t, 2 * p, 2 * p), np.float64)
    for ti in range(t):
        a = g_big @ (ker[ti].reshape(-1, 1) * f_big)    # (P, P) complex
        m = (a * gram) / norm                           # fused A^H A operator
        mt = m.T                                        # row-vector convention
        w[ti] = np.block([[mt.real, mt.imag],
                          [-mt.imag, mt.real]])
    return jnp.asarray(w, jnp.bfloat16)


# ----------------------------------------------------------------------------
# Pallas kernel: single grid step, one MXU matmul per frame + f32 epilogue.
# ----------------------------------------------------------------------------
def dc_kernel(x_ref, atb_ref, w_ref, mu_ref, xout_ref, ata_ref):
    mu = mu_ref[0]
    for ti in range(x_ref.shape[0]):            # static T (=2), unrolled
        xt = x_ref[ti]                          # (B, 2P) f32, lane-dense
        ata = jnp.dot(xt.astype(jnp.bfloat16), w_ref[ti],
                      preferred_element_type=jnp.float32)   # MXU, f32 acc
        ata_ref[ti] = ata
        xout_ref[ti] = xt + mu * (atb_ref[ti] - ata)         # f32 VPU epilogue


@jax.jit
def data_consistency(x, atb, w, mu):
    b, c2t, nx, ny = x.shape
    t = c2t // 2
    p = nx * ny

    def to_frames(a):          # (B, 2T, Nx, Ny) -> (T, B, 2P) as [Re | Im]
        ar = a[:, :t].reshape(b, t, p)
        ai = a[:, t:].reshape(b, t, p)
        return jnp.transpose(jnp.concatenate([ar, ai], axis=-1), (1, 0, 2))

    xout_f, ata_f = pl.pallas_call(
        dc_kernel,
        out_shape=(jax.ShapeDtypeStruct((t, b, 2 * p), jnp.float32),
                   jax.ShapeDtypeStruct((t, b, 2 * p), jnp.float32)),
        in_specs=[pl.BlockSpec(memory_space=pltpu.MemorySpace.VMEM),
                  pl.BlockSpec(memory_space=pltpu.MemorySpace.VMEM),
                  pl.BlockSpec(memory_space=pltpu.MemorySpace.VMEM),
                  pl.BlockSpec(memory_space=pltpu.MemorySpace.SMEM)],
        out_specs=(pl.BlockSpec(memory_space=pltpu.MemorySpace.VMEM),
                   pl.BlockSpec(memory_space=pltpu.MemorySpace.VMEM)),
    )(to_frames(x), to_frames(atb), w, mu)

    def from_frames(f):        # (T, B, 2P) -> (B, 2T, Nx, Ny)
        f = jnp.transpose(f, (1, 0, 2))
        re = f[..., :p].reshape(b, t, nx, ny)
        im = f[..., p:].reshape(b, t, nx, ny)
        return jnp.concatenate([re, im], axis=1)

    return from_frames(xout_f), from_frames(ata_f)


# ----------------------------------------------------------------------------
# Independent pure-JAX reference using padded FFTs (same math, separate path).
# ----------------------------------------------------------------------------
def reference(x, atb, csm_r, csm_i, ker_r, ker_i, mu, norm=1.0):
    t = x.shape[1] // 2
    nx, ny = x.shape[-2:]
    xc = (x[:, :t] + 1j * x[:, t:]).astype(jnp.complex64)
    csm = (csm_r + 1j * csm_i).astype(jnp.complex64)
    ker = (ker_r + 1j * ker_i).astype(jnp.complex64)
    xcoil = xc[:, :, None] * csm[None, None]                      # B,T,C,Nx,Ny
    pad = jnp.pad(xcoil, ((0, 0), (0, 0), (0, 0), (0, nx), (0, ny)))
    k = jnp.fft.fft2(pad)
    m = k * ker[None, :, None]
    u = jnp.fft.ifft2(m)[..., :nx, :ny]
    ata_c = jnp.sum(u * jnp.conj(csm)[None, None], axis=2) / norm
    ata = jnp.concatenate([jnp.real(ata_c), jnp.imag(ata_c)], axis=1)
    return x + mu[0] * (atb - ata), ata


if __name__ == "__main__":
    key = jax.random.PRNGKey(0)
    ks = jax.random.split(key, 6)
    x = jax.random.normal(ks[0], (B, 2 * T, NX, NY), jnp.float32)
    atb = jax.random.normal(ks[1], (B, 2 * T, NX, NY), jnp.float32)
    csm_r = jax.random.normal(ks[2], (NCOIL, NX, NY), jnp.float32) / np.sqrt(NCOIL)
    csm_i = jax.random.normal(ks[3], (NCOIL, NX, NY), jnp.float32) / np.sqrt(NCOIL)
    ker_r = jax.random.normal(ks[4], (T, N2X, N2Y), jnp.float32)
    ker_i = jax.random.normal(ks[5], (T, N2X, N2Y), jnp.float32)
    mu = jnp.array([0.01], jnp.float32)   # torch.nn.Parameter(torch.Tensor([0.01]))
    norm = 1.0

    w = build_dc_operators(csm_r, csm_i, ker_r, ker_i, norm)   # constants precompute
    x_out, ata_x = data_consistency(x, atb, w, mu)
    jax.block_until_ready((x_out, ata_x))

    x_ref, ata_ref = reference(x, atb, csm_r, csm_i, ker_r, ker_i, mu, norm)
    np.testing.assert_allclose(np.asarray(ata_x), np.asarray(ata_ref),
                               rtol=1e-2, atol=1e-2)
    np.testing.assert_allclose(np.asarray(x_out), np.asarray(x_ref),
                               rtol=1e-2, atol=1e-2)
    assert x_out.shape == (B, 2 * T, NX, NY) and ata_x.shape == (B, 2 * T, NX, NY)
    print("KERNEL_OK")
</pallas_src>

<mosaic_0001>
module attributes {stable_mosaic.version = 11 : i64} {
  func.func @dc_kernel(%arg0: memref<2x2x512xf32, #tpu.memory_space<vmem>>, %arg1: memref<2x2x512xf32, #tpu.memory_space<vmem>>, %arg2: memref<2x512x512xbf16, #tpu.memory_space<vmem>>, %arg3: memref<1xf32, #tpu.memory_space<smem>>, %arg4: memref<2x2x512xf32, #tpu.memory_space<vmem>>, %arg5: memref<2x2x512xf32, #tpu.memory_space<vmem>>) attributes {dimension_semantics = [], scalar_prefetch = 0 : i64, scratch_operands = 0 : i64, tpu.core_type = #tpu.core_type<tc>} {
    %c0 = arith.constant 0 : index
    %0 = memref.load %arg3[%c0] : memref<1xf32, #tpu.memory_space<smem>>
    %c0_0 = arith.constant 0 : index
    %c0_1 = arith.constant 0 : index
    %c0_2 = arith.constant 0 : index
    %1 = vector.load %arg0[%c0_0, %c0_1, %c0_2] : memref<2x2x512xf32, #tpu.memory_space<vmem>>, vector<1x2x512xf32>
    %2 = vector.shape_cast %1 : vector<1x2x512xf32> to vector<2x512xf32>
    %3 = arith.truncf %2 : vector<2x512xf32> to vector<2x512xbf16>
    %c0_3 = arith.constant 0 : index
    %c0_4 = arith.constant 0 : index
    %c0_5 = arith.constant 0 : index
    %4 = vector.load %arg2[%c0_3, %c0_4, %c0_5] : memref<2x512x512xbf16, #tpu.memory_space<vmem>>, vector<1x512x512xbf16>
    %5 = vector.shape_cast %4 : vector<1x512x512xbf16> to vector<512x512xbf16>
    %cst = arith.constant dense<0.000000e+00> : vector<2x512xf32>
    %6 = tpu.matmul %3, %5, %cst {dimension_numbers = #tpu.dot_dimension_numbers<[1], [0], [0], [1], [0, 0, 1, 1], [], []>} : vector<2x512xbf16>, vector<512x512xbf16>, vector<2x512xf32> -> vector<2x512xf32>
    %c0_6 = arith.constant 0 : index
    %c0_7 = arith.constant 0 : index
    %c0_8 = arith.constant 0 : index
    %7 = vector.load %arg5[%c0_6, %c0_7, %c0_8] : memref<2x2x512xf32, #tpu.memory_space<vmem>>, vector<1x2x512xf32>
    %8 = vector.shape_cast %7 : vector<1x2x512xf32> to vector<2x512xf32>
    %9 = vector.shape_cast %6 : vector<2x512xf32> to vector<1x2x512xf32>
    tpu.vector_store %arg5[%c0_6, %c0_7, %c0_8], %9 {strides = array<i32>} : memref<2x2x512xf32, #tpu.memory_space<vmem>>, vector<1x2x512xf32>,
    %c0_9 = arith.constant 0 : index
    %c0_10 = arith.constant 0 : index
    %c0_11 = arith.constant 0 : index
    %10 = vector.load %arg1[%c0_9, %c0_10, %c0_11] : memref<2x2x512xf32, #tpu.memory_space<vmem>>, vector<1x2x512xf32>
    %11 = vector.shape_cast %10 : vector<1x2x512xf32> to vector<2x512xf32>
    %12 = arith.subf %11, %6 : vector<2x512xf32>
    %13 = vector.broadcast %0 : f32 to vector<2x512xf32>
    %14 = arith.mulf %13, %12 : vector<2x512xf32>
    %15 = arith.addf %2, %14 : vector<2x512xf32>
    %c0_12 = arith.constant 0 : index
    %c0_13 = arith.constant 0 : index
    %c0_14 = arith.constant 0 : index
    %16 = vector.load %arg4[%c0_12, %c0_13, %c0_14] : memref<2x2x512xf32, #tpu.memory_space<vmem>>, vector<1x2x512xf32>
    %17 = vector.shape_cast %16 : vector<1x2x512xf32> to vector<2x512xf32>
    %18 = vector.shape_cast %15 : vector<2x512xf32> to vector<1x2x512xf32>
    tpu.vector_store %arg4[%c0_12, %c0_13, %c0_14], %18 {strides = array<i32>} : memref<2x2x512xf32, #tpu.memory_space<vmem>>, vector<1x2x512xf32>,
    %c1 = arith.constant 1 : index
    %c0_15 = arith.constant 0 : index
    %c0_16 = arith.constant 0 : index
    %19 = vector.load %arg0[%c1, %c0_15, %c0_16] : memref<2x2x512xf32, #tpu.memory_space<vmem>>, vector<1x2x512xf32>
    %20 = vector.shape_cast %19 : vector<1x2x512xf32> to vector<2x512xf32>
    %21 = arith.truncf %20 : vector<2x512xf32> to vector<2x512xbf16>
    %c1_17 = arith.constant 1 : index
    %c0_18 = arith.constant 0 : index
    %c0_19 = arith.constant 0 : index
    %22 = vector.load %arg2[%c1_17, %c0_18, %c0_19] : memref<2x512x512xbf16, #tpu.memory_space<vmem>>, vector<1x512x512xbf16>
    %23 = vector.shape_cast %22 : vector<1x512x512xbf16> to vector<512x512xbf16>
    %cst_20 = arith.constant dense<0.000000e+00> : vector<2x512xf32>
    %24 = tpu.matmul %21, %23, %cst_20 {dimension_numbers = #tpu.dot_dimension_numbers<[1], [0], [0], [1], [0, 0, 1, 1], [], []>} : vector<2x512xbf16>, vector<512x512xbf16>, vector<2x512xf32> -> vector<2x512xf32>
    %c1_21 = arith.constant 1 : index
    %c0_22 = arith.constant 0 : index
    %c0_23 = arith.constant 0 : index
    %25 = vector.load %arg5[%c1_21, %c0_22, %c0_23] : memref<2x2x512xf32, #tpu.memory_space<vmem>>, vector<1x2x512xf32>
    %26 = vector.shape_cast %25 : vector<1x2x512xf32> to vector<2x512xf32>
    %27 = vector.shape_cast %24 : vector<2x512xf32> to vector<1x2x512xf32>
    tpu.vector_store %arg5[%c1_21, %c0_22, %c0_23], %27 {strides = array<i32>} : memref<2x2x512xf32, #tpu.memory_space<vmem>>, vector<1x2x512xf32>,
    %c1_24 = arith.constant 1 : index
    %c0_25 = arith.constant 0 : index
    %c0_26 = arith.constant 0 : index
    %28 = vector.load %arg1[%c1_24, %c0_25, %c0_26] : memref<2x2x512xf32, #tpu.memory_space<vmem>>, vector<1x2x512xf32>
    %29 = vector.shape_cast %28 : vector<1x2x512xf32> to vector<2x512xf32>
    %30 = arith.subf %29, %24 : vector<2x512xf32>
    %31 = vector.broadcast %0 : f32 to vector<2x512xf32>
    %32 = arith.mulf %31, %30 : vector<2x512xf32>
    %33 = arith.addf %20, %32 : vector<2x512xf32>
    %c1_27 = arith.constant 1 : index
    %c0_28 = arith.constant 0 : index
    %c0_29 = arith.constant 0 : index
    %34 = vector.load %arg4[%c1_27, %c0_28, %c0_29] : memref<2x2x512xf32, #tpu.memory_space<vmem>>, vector<1x2x512xf32>
    %35 = vector.shape_cast %34 : vector<1x2x512xf32> to vector<2x512xf32>
    %36 = vector.shape_cast %33 : vector<2x512xf32> to vector<1x2x512xf32>
    tpu.vector_store %arg4[%c1_27, %c0_28, %c0_29], %36 {strides = array<i32>} : memref<2x2x512xf32, #tpu.memory_space<vmem>>, vector<1x2x512xf32>,
    return
  }
}

</mosaic_0001>

<bundles_post_ra>
// kernel: data_consistency.1
= control target key start
LH: loop header
LB: loop body
LE: loop exit
PB: predicated region body
PF: predicated region fallthrough
CT: control target
= control target key end

     0   :  { %12 = vsyncpa [#allocation4], 0  ;;  %s2715_s18 = smov [#allocation3]   ;;  %s2825_s0 = inlined_call_operand.vmem [shape: f32[2,2,512], index: 0, kind: input, shape index: {}]   ;;  %s2826_s1 = inlined_call_operand.vmem [shape: f32[2,2,512], index: 1, kind: input, shape index: {}]   ;;  %s2827_s2 = inlined_call_operand.hbm [shape: bf16[2,512,512], index: 2, kind: input, shape index: {}]   ;;  %s2828_s3 = inlined_call_operand.<no memory space> [shape: f32[1], index: 3, kind: input, shape index: {}]   ;;  %s2829_s4 = inlined_call_operand.vmem [shape: f32[2,2,512], index: 4, kind: output, shape index: {0}]   ;;  %s2830_s5 = inlined_call_operand.vmem [shape: f32[2,2,512], index: 5, kind: output, shape index: {1}]  }
   0x1   :  { %s22_s19 = sshll.u32 %s2715_s18, 4  ;;  %s2691_s22 = scalar_lea.hbm %s2827_s2, 32768  ;;  %s23_s19 = int_to_ptr.vmem [resolvable:$true] %s22_s19 }
   0x2   :  { %p2692_p0 = scmp.ne.s32.totalorder %s2827_s2, %s2691_s22  ;;  %p2695_p1 = scmp.lt.u32.totalorder %s2691_s22, %s2827_s2 }
   0x4   :  { %p2697_p2 = pnand %p2695_p1, %p2692_p0 }
   0x6   :  { %2700 = shalt.err (!%p2697_p2)
}
   0x7   :  { %s2701_s27 = scalar_lea.vmem %s23_s19, 32768  ;;  %p2706_p4 = scmp.lt.s32.totalorder %s23_s19, %s23_s19 }
   0x8   :  { %p2702_p3 = scmp.ne.s32.totalorder %s23_s19, %s2701_s27  ;;  %p2707_p5 = scmp.lt.s32.totalorder %s2701_s27, %s2701_s27 }
   0xa   :  { %p2708_p6 = por %p2707_p5, %p2706_p4 }
   0xc   :  { %p2709_p7 = pnand %p2708_p6, %p2702_p3 }
   0xe   :  { %2712 = shalt.err (!%p2709_p7)
}
   0xf   :  { %s2716_s28 = smov 256   ;;  %s2717_s29 = smov 16  }
  0x10   :  { %28 = dma.hbm_to_vmem [thread:$0]  %s2827_s2, 32768, %s23_s19, [#allocation4], %s2716_s28, %s2716_s28, %s2717_s29  }
  0x11   :  { %2713 = dma.done.wait [#allocation4], 32768  }
  0x12   :  { %2714 = vsyncadd [#allocation4], 4294934528  ;;  %v2304_v0 = vld [vmem:[#allocation3 + $0x4] ss:$16 sps:$4 sm:$0xff]   ;;  %v2306_v1 = vld [vmem:[#allocation3 + $0xc] ss:$16 sps:$4 sm:$0xff]   ;;  %v41_v38 = vlaneseq }
  0x13   :  { %830 = vmatprep.subr.bf16.mxu0 %v2304_v0  ;;  %v2308_v2 = vld [vmem:[#allocation3] ss:$16 sps:$4 sm:$0xff]   ;;  %v2309_v3 = vld [vmem:[#allocation3 + $0x8] ss:$16 sps:$4 sm:$0xff]   ;;  %912 = vmatprep.subr.bf16.mxu1 %v2306_v1  ;;  %v2310_v4 = vld [vmem:[#allocation3 + $0x24] ss:$16 sps:$4 sm:$0xff]  }
  0x14   :  { %831 = vmatpush1.bf16.msra.mxu0 %v2308_v2  ;;  %913 = vmatpush1.bf16.msra.mxu1 %v2309_v3  ;;  %v2312_v5 = vld [vmem:[#allocation3 + $0x2c] ss:$16 sps:$4 sm:$0xff]   ;;  %v2314_v6 = vld [vmem:[#allocation3 + $0x20] ss:$16 sps:$4 sm:$0xff]   ;;  %v2315_v7 = vld [vmem:[#allocation3 + $0x28] ss:$16 sps:$4 sm:$0xff]  }
  0x15   :  { %832 = vmatprep.subr.bf16.mxu0 %v2310_v4  ;;  %914 = vmatprep.subr.bf16.mxu1 %v2312_v5  ;;  %v2316_v8 = vld [vmem:[#allocation3 + $0x44] ss:$16 sps:$4 sm:$0xff]   ;;  %v2318_v9 = vld [vmem:[#allocation3 + $0x4c] ss:$16 sps:$4 sm:$0xff]   ;;  %v2320_v10 = vld [vmem:[#allocation3 + $0x40] ss:$16 sps:$4 sm:$0xff]  }
  0x16   :  { %v2321_v11 = vld [vmem:[#allocation3 + $0x48] ss:$16 sps:$4 sm:$0xff]   ;;  %v2322_v12 = vld [vmem:[#allocation3 + $0x64] ss:$16 sps:$4 sm:$0xff]   ;;  %v2324_v13 = vld [vmem:[#allocation3 + $0x6c] ss:$16 sps:$4 sm:$0xff]  }
  0x17   :  { %v2326_v14 = vld [vmem:[#allocation3 + $0x60] ss:$16 sps:$4 sm:$0xff]   ;;  %v2327_v15 = vld [vmem:[#allocation3 + $0x68] ss:$16 sps:$4 sm:$0xff]   ;;  %v2328_v16 = vld [vmem:[#allocation3 + $0x84] ss:$16 sps:$4 sm:$0xff]  }
  0x18   :  { %833 = vmatpush1.bf16.msra.mxu0 %v2314_v6  ;;  %915 = vmatpush1.bf16.msra.mxu1 %v2315_v7  ;;  %v2330_v17 = vld [vmem:[#allocation3 + $0x8c] ss:$16 sps:$4 sm:$0xff]   ;;  %v2332_v18 = vld [vmem:[#allocation3 + $0x80] ss:$16 sps:$4 sm:$0xff]   ;;  %v2333_v19 = vld [vmem:[#allocation3 + $0x88] ss:$16 sps:$4 sm:$0xff]  }
  0x19   :  { %834 = vmatprep.subr.bf16.mxu0 %v2316_v8  ;;  %916 = vmatprep.subr.bf16.mxu1 %v2318_v9  ;;  %v2334_v20 = vld [vmem:[#allocation3 + $0xa4] ss:$16 sps:$4 sm:$0xff]   ;;  %v2336_v21 = vld [vmem:[#allocation3 + $0xac] ss:$16 sps:$4 sm:$0xff]   ;;  %v2338_v22 = vld [vmem:[#allocation3 + $0xa0] ss:$16 sps:$4 sm:$0xff]  }
  0x1a   :  { %v2339_v23 = vld [vmem:[#allocation3 + $0xa8] ss:$16 sps:$4 sm:$0xff]   ;;  %v2340_v24 = vld [vmem:[#allocation3 + $0xc4] ss:$16 sps:$4 sm:$0xff]   ;;  %v2342_v25 = vld [vmem:[#allocation3 + $0xcc] ss:$16 sps:$4 sm:$0xff]  }
  0x1b   :  { %v2344_v26 = vld [vmem:[#allocation3 + $0xc0] ss:$16 sps:$4 sm:$0xff]   ;;  %v2345_v27 = vld [vmem:[#allocation3 + $0xc8] ss:$16 sps:$4 sm:$0xff]   ;;  %v2346_v28 = vld [vmem:[#allocation3 + $0xe4] ss:$16 sps:$4 sm:$0xff]  }
  0x1c   :  { %835 = vmatpush1.bf16.msra.mxu0 %v2320_v10  ;;  %917 = vmatpush1.bf16.msra.mxu1 %v2321_v11  ;;  %v2348_v29 = vld [vmem:[#allocation3 + $0xec] ss:$16 sps:$4 sm:$0xff]   ;;  %v2350_v30 = vld [vmem:[#allocation3 + $0xe0] ss:$16 sps:$4 sm:$0xff]   ;;  %v2351_v31 = vld [vmem:[#allocation3 + $0xe8] ss:$16 sps:$4 sm:$0xff]  }
  0x1d   :  { %836 = vmatprep.subr.bf16.mxu0 %v2322_v12  ;;  %918 = vmatprep.subr.bf16.mxu1 %v2324_v13  ;;  %v2352_v32 = vld [vmem:[#allocation3 + $0x104] ss:$16 sps:$4 sm:$0xff]   ;;  %v2354_v33 = vld [vmem:[#allocation3 + $0x10c] ss:$16 sps:$4 sm:$0xff]   ;;  %v2356_v34 = vld [vmem:[#allocation3 + $0x100] ss:$16 sps:$4 sm:$0xff]  }
  0x1e   :  { %v2357_v35 = vld [vmem:[#allocation3 + $0x108] ss:$16 sps:$4 sm:$0xff]   ;;  %v2718_v36 = vmov 1983009808   ;;  %v2358_v39 = vld [vmem:[#allocation3 + $0x124] ss:$16 sps:$4 sm:$0xff]  }
  0x1f   :  { %v39_v37 = vunpack.c.l.s4 %v2718_v36  ;;  %v2360_v40 = vld [vmem:[#allocation3 + $0x12c] ss:$16 sps:$4 sm:$0xff]   ;;  %v2362_v41 = vld [vmem:[#allocation3 + $0x120] ss:$16 sps:$4 sm:$0xff]   ;;  %v42_v43 = vshrl.u32 %v41_v38, 7 }
  0x20   :  { %837 = vmatpush1.bf16.msra.mxu0 %v2326_v14  ;;  %919 = vmatpush1.bf16.msra.mxu1 %v2327_v15  ;;  %v2363_v44 = vld [vmem:[#allocation3 + $0x128] ss:$16 sps:$4 sm:$0xff]   ;;  %v2364_v45 = vld [vmem:[#allocation3 + $0x144] ss:$16 sps:$4 sm:$0xff]   ;;  %v2366_v46 = vld [vmem:[#allocation3 + $0x14c] ss:$16 sps:$4 sm:$0xff]  }
  0x21   :  { %838 = vmatprep.subr.bf16.mxu0 %v2328_v16  ;;  %920 = vmatprep.subr.bf16.mxu1 %v2330_v17  ;;  %v40_v42 = vunpack.c.0.s8 %v39_v37  ;;  %v2368_v47 = vld [vmem:[#allocation3 + $0x140] ss:$16 sps:$4 sm:$0xff]   ;;  %v2369_v48 = vld [vmem:[#allocation3 + $0x148] ss:$16 sps:$4 sm:$0xff]   ;;  %v2370_v50 = vld [vmem:[#allocation3 + $0x164] ss:$16 sps:$4 sm:$0xff]  }
  0x22   :  { %v2372_v51 = vld [vmem:[#allocation3 + $0x16c] ss:$16 sps:$4 sm:$0xff]   ;;  %v35_v52 = vld [vmem:[%s2825_s0] sm:$0xff]  ;;  %v2375_v55 = vld [vmem:[#allocation3 + $0x168] ss:$16 sps:$4 sm:$0xff]  }
  0x23   :  { %v2761_v49 = vsub.s32 %v40_v42, %v42_v43  ;;  %v2374_v53 = vld [vmem:[#allocation3 + $0x160] ss:$16 sps:$4 sm:$0xff]   ;;  %v2376_v56 = vld [vmem:[#allocation3 + $0x184] ss:$16 sps:$4 sm:$0xff]   ;;  %v2378_v57 = vld [vmem:[#allocation3 + $0x18c] ss:$16 sps:$4 sm:$0xff]   ;;  %v37_v4 = vcombine.high %v35_v52, %v35_v52 }
  0x24   :  { %839 = vmatpush1.bf16.msra.mxu0 %v2332_v18  ;;  %921 = vmatpush1.bf16.msra.mxu1 %v2333_v19  ;;  %v2380_v59 = vld [vmem:[#allocation3 + $0x180] ss:$16 sps:$4 sm:$0xff]   ;;  %v2381_v61 = vld [vmem:[#allocation3 + $0x188] ss:$16 sps:$4 sm:$0xff]   ;;  %v2382_v62 = vld [vmem:[#allocation3 + $0x1a4] ss:$16 sps:$4 sm:$0xff]  }
  0x25   :  { %840 = vmatprep.subr.bf16.mxu0 %v2334_v20  ;;  %922 = vmatprep.subr.bf16.mxu1 %v2336_v21  ;;  %v44_v54 = vrot.slane %v35_v52, %v2761_v49  ;;  %v2384_v63 = vld [vmem:[#allocation3 + $0x1ac] ss:$16 sps:$4 sm:$0xff]   ;;  %v2386_v0 = vld [vmem:[#allocation3 + $0x1a0] ss:$16 sps:$4 sm:$0xff]   ;;  %v2387_v1 = vld [vmem:[#allocation3 + $0x1a8] ss:$16 sps:$4 sm:$0xff]   ;;  %v2768_v9 = vrot.slane %v37_v4, %v2761_v49 }
  0x26   :  { %v2388_v2 = vld [vmem:[#allocation3 + $0x1c4] ss:$16 sps:$4 sm:$0xff]   ;;  %v2390_v3 = vld [vmem:[#allocation3 + $0x1cc] ss:$16 sps:$4 sm:$0xff]   ;;  %v2392_v5 = vld [vmem:[#allocation3 + $0x1c0] ss:$16 sps:$4 sm:$0xff]  }
  0x27   :  { %v52_v58 = vcombine.high %v44_v54, %v44_v54  ;;  %v2393_v6 = vld [vmem:[#allocation3 + $0x1c8] ss:$16 sps:$4 sm:$0xff]   ;;  %v2394_v7 = vld [vmem:[#allocation3 + $0x1e4] ss:$16 sps:$4 sm:$0xff]   ;;  %v2396_v8 = vld [vmem:[#allocation3 + $0x1ec] ss:$16 sps:$4 sm:$0xff]   ;;  %v53_v14 = vcombine.high %v2768_v9, %v2768_v9  ;;  %v58_v16 = vpack.c.bf16 %v44_v54, %v44_v54 }
  0x28   :  { %841 = vmatpush1.bf16.msra.mxu0 %v2338_v22  ;;  %923 = vmatpush1.bf16.msra.mxu1 %v2339_v23  ;;  %v2398_v10 = vld [vmem:[#allocation3 + $0x1e0] ss:$16 sps:$4 sm:$0xff]   ;;  %v2399_v11 = vld [vmem:[#allocation3 + $0x1e8] ss:$16 sps:$4 sm:$0xff]   ;;  %v2402_v12 = vld [vmem:[#allocation3 + $0x204] ss:$16 sps:$4 sm:$0xff]  }
  0x29   :  { %842 = vmatprep.subr.bf16.mxu0 %v2340_v24  ;;  %924 = vmatprep.subr.bf16.mxu1 %v2342_v25  ;;  %v59_v60 = vpack.c.bf16 %v52_v58, %v52_v58  ;;  %v2405_v13 = vld [vmem:[#allocation3 + $0x20c] ss:$16 sps:$4 sm:$0xff]   ;;  %v2400_v15 = vld [vmem:[#allocation3 + $0x200] ss:$16 sps:$4 sm:$0xff]   ;;  %v2403_v17 = vld [vmem:[#allocation3 + $0x208] ss:$16 sps:$4 sm:$0xff]   ;;  %v61_v20 = vpack.c.bf16 %v53_v14, %v53_v14 }
  0x2a   :  { %v2408_v18 = vld [vmem:[#allocation3 + $0x224] ss:$16 sps:$4 sm:$0xff]   ;;  %v2411_v19 = vld [vmem:[#allocation3 + $0x22c] ss:$16 sps:$4 sm:$0xff]   ;;  %v2406_v21 = vld [vmem:[#allocation3 + $0x220] ss:$16 sps:$4 sm:$0xff]  }
  0x2b   :  { %862 = vmatprep.mubr.bf16.mxu0 %v59_v60  ;;  %944 = vmatprep.mubr.bf16.mxu1 %v59_v60  ;;  %v2409_v22 = vld [vmem:[#allocation3 + $0x228] ss:$16 sps:$4 sm:$0xff]   ;;  %v2414_v23 = vld [vmem:[#allocation3 + $0x244] ss:$16 sps:$4 sm:$0xff]   ;;  %v2417_v24 = vld [vmem:[#allocation3 + $0x24c] ss:$16 sps:$4 sm:$0xff]  }
  0x2c   :  { %843 = vmatpush1.bf16.msra.mxu0 %v2344_v26  ;;  %925 = vmatpush1.bf16.msra.mxu1 %v2345_v27  ;;  %v2412_v25 = vld [vmem:[#allocation3 + $0x240] ss:$16 sps:$4 sm:$0xff]   ;;  %v2415_v26 = vld [vmem:[#allocation3 + $0x248] ss:$16 sps:$4 sm:$0xff]   ;;  %v2420_v27 = vld [vmem:[#allocation3 + $0x264] ss:$16 sps:$4 sm:$0xff]  }
  0x2d   :  { %844 = vmatprep.subr.bf16.mxu0 %v2346_v28  ;;  %926 = vmatprep.subr.bf16.mxu1 %v2348_v29  ;;  %v2423_v28 = vld [vmem:[#allocation3 + $0x26c] ss:$16 sps:$4 sm:$0xff]   ;;  %v2418_v29 = vld [vmem:[#allocation3 + $0x260] ss:$16 sps:$4 sm:$0xff]   ;;  %v2433_v38 = vld [vmem:[#allocation3 + $0x2a8] ss:$16 sps:$4 sm:$0xff]  }
  0x2e   :  { %v2435_v36 = vld [vmem:[#allocation3 + $0x2ac] ss:$16 sps:$4 sm:$0xff]   ;;  %v2430_v37 = vld [vmem:[#allocation3 + $0x2a0] ss:$16 sps:$4 sm:$0xff]   ;;  %v2439_v42 = vld [vmem:[#allocation3 + $0x2c8] ss:$16 sps:$4 sm:$0xff]  }
  0x2f   :  { %v2444_v43 = vld [vmem:[#allocation3 + $0x2e4] ss:$16 sps:$4 sm:$0xff]   ;;  %v2454_v54 = vld [vmem:[#allocation3 + $0x320] ss:$16 sps:$4 sm:$0xff]   ;;  %v2495_v14 = vld [vmem:[#allocation3 + $0x3ec] ss:$16 sps:$4 sm:$0xff]  }
  0x30   :  { %845 = vmatpush1.bf16.msra.mxu0 %v2350_v30  ;;  %927 = vmatpush1.bf16.msra.mxu1 %v2351_v31  ;;  %v2421_v30 = vld [vmem:[#allocation3 + $0x268] ss:$16 sps:$4 sm:$0xff]   ;;  %v2426_v31 = vld [vmem:[#allocation3 + $0x284] ss:$16 sps:$4 sm:$0xff]   ;;  %v2460_v58 = vld [vmem:[#allocation3 + $0x340] ss:$16 sps:$4 sm:$0xff]  }
  0x31   :  { %846 = vmatprep.subr.bf16.mxu0 %v2352_v32  ;;  %928 = vmatprep.subr.bf16.mxu1 %v2354_v33  ;;  %v2429_v32 = vld [vmem:[#allocation3 + $0x28c] ss:$16 sps:$4 sm:$0xff]   ;;  %v2424_v33 = vld [vmem:[#allocation3 + $0x280] ss:$16 sps:$4 sm:$0xff]   ;;  %v2456_v52 = vld [vmem:[#allocation3 + $0x324] ss:$16 sps:$4 sm:$0xff]  }
  0x32   :  { %v2468_v60 = vld [vmem:[#allocation3 + $0x364] ss:$16 sps:$4 sm:$0xff]  }
  0x33   :  { %v2480_v4 = vld [vmem:[#allocation3 + $0x3a4] ss:$16 sps:$4 sm:$0xff]  }
  0x34   :  { %847 = vmatpush1.bf16.msra.mxu0 %v2356_v34  ;;  %929 = vmatpush1.bf16.msra.mxu1 %v2357_v35  ;;  %v2427_v34 = vld [vmem:[#allocation3 + $0x288] ss:$16 sps:$4 sm:$0xff]   ;;  %v2432_v35 = vld [vmem:[#allocation3 + $0x2a4] ss:$16 sps:$4 sm:$0xff]  }
  0x35   :  { %848 = vmatprep.subr.bf16.mxu0 %v2358_v39  ;;  %930 = vmatprep.subr.bf16.mxu1 %v2360_v40  ;;  %v2438_v39 = vld [vmem:[#allocation3 + $0x2c4] ss:$16 sps:$4 sm:$0xff]   ;;  %v2441_v40 = vld [vmem:[#allocation3 + $0x2cc] ss:$16 sps:$4 sm:$0xff]  }
  0x38   :  { %849 = vmatpush1.bf16.msra.mxu0 %v2362_v41  ;;  %931 = vmatpush1.bf16.msra.mxu1 %v2363_v44  ;;  %v2436_v41 = vld [vmem:[#allocation3 + $0x2c0] ss:$16 sps:$4 sm:$0xff]   ;;  %v2447_v44 = vld [vmem:[#allocation3 + $0x2ec] ss:$16 sps:$4 sm:$0xff]  }
  0x39   :  { %850 = vmatprep.subr.bf16.mxu0 %v2364_v45  ;;  %932 = vmatprep.subr.bf16.mxu1 %v2366_v46  ;;  %v2442_v45 = vld [vmem:[#allocation3 + $0x2e0] ss:$16 sps:$4 sm:$0xff]   ;;  %v2445_v46 = vld [vmem:[#allocation3 + $0x2e8] ss:$16 sps:$4 sm:$0xff]  }
  0x3c   :  { %851 = vmatpush1.bf16.msra.mxu0 %v2368_v47  ;;  %933 = vmatpush1.bf16.msra.mxu1 %v2369_v48  ;;  %v2450_v47 = vld [vmem:[#allocation3 + $0x304] ss:$16 sps:$4 sm:$0xff]   ;;  %v2453_v48 = vld [vmem:[#allocation3 + $0x30c] ss:$16 sps:$4 sm:$0xff]  }
  0x3d   :  { %852 = vmatprep.subr.bf16.mxu0 %v2370_v50  ;;  %934 = vmatprep.subr.bf16.mxu1 %v2372_v51  ;;  %v2448_v50 = vld [vmem:[#allocation3 + $0x300] ss:$16 sps:$4 sm:$0xff]   ;;  %v2451_v51 = vld [vmem:[#allocation3 + $0x308] ss:$16 sps:$4 sm:$0xff]  }
  0x40   :  { %853 = vmatpush1.bf16.msra.mxu0 %v2374_v53  ;;  %935 = vmatpush1.bf16.msra.mxu1 %v2375_v55  ;;  %v2459_v53 = vld [vmem:[#allocation3 + $0x32c] ss:$16 sps:$4 sm:$0xff]   ;;  %v2457_v55 = vld [vmem:[#allocation3 + $0x328] ss:$16 sps:$4 sm:$0xff]  }
  0x41   :  { %854 = vmatprep.subr.bf16.mxu0 %v2376_v56  ;;  %936 = vmatprep.subr.bf16.mxu1 %v2378_v57  ;;  %v2462_v56 = vld [vmem:[#allocation3 + $0x344] ss:$16 sps:$4 sm:$0xff]   ;;  %v2465_v57 = vld [vmem:[#allocation3 + $0x34c] ss:$16 sps:$4 sm:$0xff]  }
  0x44   :  { %855 = vmatpush1.bf16.msra.mxu0 %v2380_v59  ;;  %937 = vmatpush1.bf16.msra.mxu1 %v2381_v61  ;;  %v2463_v59 = vld [vmem:[#allocation3 + $0x348] ss:$16 sps:$4 sm:$0xff]   ;;  %v2471_v61 = vld [vmem:[#allocation3 + $0x36c] ss:$16 sps:$4 sm:$0xff]  }
  0x45   :  { %856 = vmatprep.subr.bf16.mxu0 %v2382_v62  ;;  %938 = vmatprep.subr.bf16.mxu1 %v2384_v63  ;;  %v2466_v62 = vld [vmem:[#allocation3 + $0x360] ss:$16 sps:$4 sm:$0xff]   ;;  %v2469_v63 = vld [vmem:[#allocation3 + $0x368] ss:$16 sps:$4 sm:$0xff]  }
  0x48   :  { %857 = vmatpush1.bf16.msra.mxu0 %v2386_v0  ;;  %939 = vmatpush1.bf16.msra.mxu1 %v2387_v1  ;;  %v2474_v0 = vld [vmem:[#allocation3 + $0x384] ss:$16 sps:$4 sm:$0xff]   ;;  %v2477_v1 = vld [vmem:[#allocation3 + $0x38c] ss:$16 sps:$4 sm:$0xff]  }
  0x49   :  { %858 = vmatprep.subr.bf16.mxu0 %v2388_v2  ;;  %940 = vmatprep.subr.bf16.mxu1 %v2390_v3  ;;  %v2472_v2 = vld [vmem:[#allocation3 + $0x380] ss:$16 sps:$4 sm:$0xff]   ;;  %v2475_v3 = vld [vmem:[#allocation3 + $0x388] ss:$16 sps:$4 sm:$0xff]  }
  0x4c   :  { %859 = vmatpush1.bf16.msra.mxu0 %v2392_v5  ;;  %941 = vmatpush1.bf16.msra.mxu1 %v2393_v6  ;;  %v2483_v5 = vld [vmem:[#allocation3 + $0x3ac] ss:$16 sps:$4 sm:$0xff]   ;;  %v2478_v6 = vld [vmem:[#allocation3 + $0x3a0] ss:$16 sps:$4 sm:$0xff]  }
  0x4d   :  { %860 = vmatprep.subr.bf16.mxu0 %v2394_v7  ;;  %942 = vmatprep.subr.bf16.mxu1 %v2396_v8  ;;  %v2481_v7 = vld [vmem:[#allocation3 + $0x3a8] ss:$16 sps:$4 sm:$0xff]   ;;  %v2486_v8 = vld [vmem:[#allocation3 + $0x3c4] ss:$16 sps:$4 sm:$0xff]  }
  0x50   :  { %861 = vmatpush1.bf16.msra.mxu0 %v2398_v10  ;;  %943 = vmatpush1.bf16.msra.mxu1 %v2399_v11  ;;  %v2489_v10 = vld [vmem:[#allocation3 + $0x3cc] ss:$16 sps:$4 sm:$0xff]   ;;  %v2484_v11 = vld [vmem:[#allocation3 + $0x3c0] ss:$16 sps:$4 sm:$0xff]  }
  0x51   :  { %871 = vmatprep.subr.bf16.mxu0 %v2402_v12  ;;  %953 = vmatprep.subr.bf16.mxu1 %v2405_v13  ;;  %v2487_v12 = vld [vmem:[#allocation3 + $0x3c8] ss:$16 sps:$4 sm:$0xff]   ;;  %v2492_v13 = vld [vmem:[#allocation3 + $0x3e4] ss:$16 sps:$4 sm:$0xff]  }
  0x53   :  { %863 = vmatmul.mubr.bf16.vlgmr.msra.gmra.mrb[0].mxu0 %v58_v16  ;;  %945 = vmatmul.mubr.bf16.vlgmr.msra.gmra.mrb[0].mxu1 %v58_v16  ;;  %v2493_v16 = vld [vmem:[#allocation3 + $0x3e8] ss:$16 sps:$4 sm:$0xff]  }
  0x54   :  { %872 = vmatpush1.bf16.msra.mxu0 %v2400_v15  ;;  %954 = vmatpush1.bf16.msra.mxu1 %v2403_v17  ;;  %v2490_v15 = vld [vmem:[#allocation3 + $0x3e0] ss:$16 sps:$4 sm:$0xff]   ;;  %v2499_v17 = vld [vmem:[#allocation3 + $0x404] ss:$16 sps:$4 sm:$0xff]  }
  0x55   :  { %873 = vmatprep.subr.bf16.mxu0 %v2408_v18  ;;  %955 = vmatprep.subr.bf16.mxu1 %v2411_v19  ;;  %v2502_v18 = vld [vmem:[#allocation3 + $0x40c] ss:$16 sps:$4 sm:$0xff]   ;;  %v60_v19 = vpack.c.bf16 %v2768_v9, %v2768_v9 }
  0x56   :  { %903 = vmatprep.mubr.bf16.mxu0 %v61_v20  ;;  %985 = vmatprep.mubr.bf16.mxu1 %v61_v20  ;;  %v2497_v20 = vld [vmem:[#allocation3 + $0x400] ss:$16 sps:$4 sm:$0xff]  }
  0x58   :  { %874 = vmatpush1.bf16.msra.mxu0 %v2406_v21  ;;  %956 = vmatpush1.bf16.msra.mxu1 %v2409_v22  ;;  %v2500_v21 = vld [vmem:[#allocation3 + $0x408] ss:$16 sps:$4 sm:$0xff]  }
  0x59   :  { %875 = vmatprep.subr.bf16.mxu0 %v2414_v23  ;;  %957 = vmatprep.subr.bf16.mxu1 %v2417_v24  ;;  %v2777_v22 = vld [vmem:[%s2825_s0 + $0x8] sm:$0xff]  ;;  %v2505_v23 = vld [vmem:[#allocation3 + $0x424] ss:$16 sps:$4 sm:$0xff]  }
  0x5a   :  { %v2508_v24 = vld [vmem:[#allocation3 + $0x42c] ss:$16 sps:$4 sm:$0xff]  }
  0x5c   :  { %876 = vmatpush1.bf16.msra.mxu0 %v2412_v25  ;;  %958 = vmatpush1.bf16.msra.mxu1 %v2415_v26  ;;  %v2781_v25 = vrot.slane %v2777_v22, %v2761_v49  ;;  %v2503_v26 = vld [vmem:[#allocation3 + $0x420] ss:$16 sps:$4 sm:$0xff]  }
  0x5d   :  { %877 = vmatprep.subr.bf16.mxu0 %v2420_v27  ;;  %959 = vmatprep.subr.bf16.mxu1 %v2423_v28  ;;  %v2506_v27 = vld [vmem:[#allocation3 + $0x428] ss:$16 sps:$4 sm:$0xff]   ;;  %v2511_v28 = vld [vmem:[#allocation3 + $0x444] ss:$16 sps:$4 sm:$0xff]  }
  0x5e   :  { %v1041_v9 = vcombine.high %v2781_v25, %v2781_v25 }
  0x60   :  { %878 = vmatpush1.bf16.msra.mxu0 %v2418_v29  ;;  %960 = vmatpush1.bf16.msra.mxu1 %v2421_v30  ;;  %v2514_v29 = vld [vmem:[#allocation3 + $0x44c] ss:$16 sps:$4 sm:$0xff]   ;;  %v1048_v30 = vpack.c.bf16 %v1041_v9, %v1041_v9  ;;  %v2590_v9 = vld [vmem:[#allocation3 + $0x5e8] ss:$16 sps:$4 sm:$0xff]  }
  0x61   :  { %879 = vmatprep.subr.bf16.mxu0 %v2426_v31  ;;  %961 = vmatprep.subr.bf16.mxu1 %v2429_v32  ;;  %v2509_v31 = vld [vmem:[#allocation3 + $0x440] ss:$16 sps:$4 sm:$0xff]   ;;  %v2512_v32 = vld [vmem:[#allocation3 + $0x448] ss:$16 sps:$4 sm:$0xff]  }
  0x64   :  { %880 = vmatpush1.bf16.msra.mxu0 %v2424_v33  ;;  %962 = vmatpush1.bf16.msra.mxu1 %v2427_v34  ;;  %v2517_v33 = vld [vmem:[#allocation3 + $0x464] ss:$16 sps:$4 sm:$0xff]   ;;  %v2520_v34 = vld [vmem:[#allocation3 + $0x46c] ss:$16 sps:$4 sm:$0xff]  }
  0x65   :  { %881 = vmatprep.subr.bf16.mxu0 %v2432_v35  ;;  %963 = vmatprep.subr.bf16.mxu1 %v2435_v36  ;;  %v2515_v35 = vld [vmem:[#allocation3 + $0x460] ss:$16 sps:$4 sm:$0xff]   ;;  %v2518_v36 = vld [vmem:[#allocation3 + $0x468] ss:$16 sps:$4 sm:$0xff]  }
  0x68   :  { %882 = vmatpush1.bf16.msra.mxu0 %v2430_v37  ;;  %964 = vmatpush1.bf16.msra.mxu1 %v2433_v38  ;;  %v2523_v37 = vld [vmem:[#allocation3 + $0x484] ss:$16 sps:$4 sm:$0xff]   ;;  %v2526_v38 = vld [vmem:[#allocation3 + $0x48c] ss:$16 sps:$4 sm:$0xff]  }
  0x69   :  { %883 = vmatprep.subr.bf16.mxu0 %v2438_v39  ;;  %965 = vmatprep.subr.bf16.mxu1 %v2441_v40  ;;  %v2521_v39 = vld [vmem:[#allocation3 + $0x480] ss:$16 sps:$4 sm:$0xff]   ;;  %v2524_v40 = vld [vmem:[#allocation3 + $0x488] ss:$16 sps:$4 sm:$0xff]  }
  0x6c   :  { %884 = vmatpush1.bf16.msra.mxu0 %v2436_v41  ;;  %966 = vmatpush1.bf16.msra.mxu1 %v2439_v42  ;;  %v2529_v41 = vld [vmem:[#allocation3 + $0x4a4] ss:$16 sps:$4 sm:$0xff]   ;;  %v2532_v42 = vld [vmem:[#allocation3 + $0x4ac] ss:$16 sps:$4 sm:$0xff]  }
  0x6d   :  { %885 = vmatprep.subr.bf16.mxu0 %v2444_v43  ;;  %967 = vmatprep.subr.bf16.mxu1 %v2447_v44  ;;  %v2527_v43 = vld [vmem:[#allocation3 + $0x4a0] ss:$16 sps:$4 sm:$0xff]   ;;  %v2530_v44 = vld [vmem:[#allocation3 + $0x4a8] ss:$16 sps:$4 sm:$0xff]  }
  0x70   :  { %886 = vmatpush1.bf16.msra.mxu0 %v2442_v45  ;;  %968 = vmatpush1.bf16.msra.mxu1 %v2445_v46  ;;  %v2535_v45 = vld [vmem:[#allocation3 + $0x4c4] ss:$16 sps:$4 sm:$0xff]   ;;  %v2538_v46 = vld [vmem:[#allocation3 + $0x4cc] ss:$16 sps:$4 sm:$0xff]  }
  0x71   :  { %887 = vmatprep.subr.bf16.mxu0 %v2450_v47  ;;  %969 = vmatprep.subr.bf16.mxu1 %v2453_v48  ;;  %v2533_v47 = vld [vmem:[#allocation3 + $0x4c0] ss:$16 sps:$4 sm:$0xff]   ;;  %v2536_v48 = vld [vmem:[#allocation3 + $0x4c8] ss:$16 sps:$4 sm:$0xff]  }
  0x74   :  { %888 = vmatpush1.bf16.msra.mxu0 %v2448_v50  ;;  %970 = vmatpush1.bf16.msra.mxu1 %v2451_v51  ;;  %v2541_v50 = vld [vmem:[#allocation3 + $0x4e4] ss:$16 sps:$4 sm:$0xff]   ;;  %v2544_v51 = vld [vmem:[#allocation3 + $0x4ec] ss:$16 sps:$4 sm:$0xff]  }
  0x75   :  { %889 = vmatprep.subr.bf16.mxu0 %v2456_v52  ;;  %971 = vmatprep.subr.bf16.mxu1 %v2459_v53  ;;  %v2539_v52 = vld [vmem:[#allocation3 + $0x4e0] ss:$16 sps:$4 sm:$0xff]   ;;  %v2542_v53 = vld [vmem:[#allocation3 + $0x4e8] ss:$16 sps:$4 sm:$0xff]  }
  0x78   :  { %890 = vmatpush1.bf16.msra.mxu0 %v2454_v54  ;;  %972 = vmatpush1.bf16.msra.mxu1 %v2457_v55  ;;  %v2547_v54 = vld [vmem:[#allocation3 + $0x504] ss:$16 sps:$4 sm:$0xff]   ;;  %v2550_v55 = vld [vmem:[#allocation3 + $0x50c] ss:$16 sps:$4 sm:$0xff]  }
  0x79   :  { %891 = vmatprep.subr.bf16.mxu0 %v2462_v56  ;;  %973 = vmatprep.subr.bf16.mxu1 %v2465_v57  ;;  %v2545_v56 = vld [vmem:[#allocation3 + $0x500] ss:$16 sps:$4 sm:$0xff]   ;;  %v2548_v57 = vld [vmem:[#allocation3 + $0x508] ss:$16 sps:$4 sm:$0xff]  }
  0x7c   :  { %892 = vmatpush1.bf16.msra.mxu0 %v2460_v58  ;;  %974 = vmatpush1.bf16.msra.mxu1 %v2463_v59  ;;  %v2553_v58 = vld [vmem:[#allocation3 + $0x524] ss:$16 sps:$4 sm:$0xff]   ;;  %v2556_v59 = vld [vmem:[#allocation3 + $0x52c] ss:$16 sps:$4 sm:$0xff]  }
  0x7d   :  { %893 = vmatprep.subr.bf16.mxu0 %v2468_v60  ;;  %975 = vmatprep.subr.bf16.mxu1 %v2471_v61  ;;  %v2551_v60 = vld [vmem:[#allocation3 + $0x520] ss:$16 sps:$4 sm:$0xff]   ;;  %v2554_v61 = vld [vmem:[#allocation3 + $0x528] ss:$16 sps:$4 sm:$0xff]  }
  0x80   :  { %894 = vmatpush1.bf16.msra.mxu0 %v2466_v62  ;;  %976 = vmatpush1.bf16.msra.mxu1 %v2469_v63  ;;  %v2559_v62 = vld [vmem:[#allocation3 + $0x544] ss:$16 sps:$4 sm:$0xff]   ;;  %v2562_v63 = vld [vmem:[#allocation3 + $0x54c] ss:$16 sps:$4 sm:$0xff]  }
  0x81   :  { %895 = vmatprep.subr.bf16.mxu0 %v2474_v0  ;;  %977 = vmatprep.subr.bf16.mxu1 %v2477_v1  ;;  %v2557_v0 = vld [vmem:[#allocation3 + $0x540] ss:$16 sps:$4 sm:$0xff]   ;;  %v2560_v1 = vld [vmem:[#allocation3 + $0x548] ss:$16 sps:$4 sm:$0xff]  }
  0x84   :  { %896 = vmatpush1.bf16.msra.mxu0 %v2472_v2  ;;  %978 = vmatpush1.bf16.msra.mxu1 %v2475_v3  ;;  %v2565_v2 = vld [vmem:[#allocation3 + $0x564] ss:$16 sps:$4 sm:$0xff]   ;;  %v2568_v3 = vld [vmem:[#allocation3 + $0x56c] ss:$16 sps:$4 sm:$0xff]  }
  0x85   :  { %897 = vmatprep.subr.bf16.mxu0 %v2480_v4  ;;  %979 = vmatprep.subr.bf16.mxu1 %v2483_v5  ;;  %v2563_v4 = vld [vmem:[#allocation3 + $0x560] ss:$16 sps:$4 sm:$0xff]   ;;  %v2566_v5 = vld [vmem:[#allocation3 + $0x568] ss:$16 sps:$4 sm:$0xff]  }
  0x88   :  { %898 = vmatpush1.bf16.msra.mxu0 %v2478_v6  ;;  %980 = vmatpush1.bf16.msra.mxu1 %v2481_v7  ;;  %v2571_v6 = vld [vmem:[#allocation3 + $0x584] ss:$16 sps:$4 sm:$0xff]   ;;  %v2574_v7 = vld [vmem:[#allocation3 + $0x58c] ss:$16 sps:$4 sm:$0xff]  }
  0x89   :  { %899 = vmatprep.subr.bf16.mxu0 %v2486_v8  ;;  %981 = vmatprep.subr.bf16.mxu1 %v2489_v10  ;;  %v2569_v8 = vld [vmem:[#allocation3 + $0x580] ss:$16 sps:$4 sm:$0xff]   ;;  %v2572_v10 = vld [vmem:[#allocation3 + $0x588] ss:$16 sps:$4 sm:$0xff]  }
  0x8c   :  { %900 = vmatpush1.bf16.msra.mxu0 %v2484_v11  ;;  %982 = vmatpush1.bf16.msra.mxu1 %v2487_v12  ;;  %v2577_v11 = vld [vmem:[#allocation3 + $0x5a4] ss:$16 sps:$4 sm:$0xff]   ;;  %v2580_v12 = vld [vmem:[#allocation3 + $0x5ac] ss:$16 sps:$4 sm:$0xff]  }
  0x8d   :  { %901 = vmatprep.subr.bf16.mxu0 %v2492_v13  ;;  %983 = vmatprep.subr.bf16.mxu1 %v2495_v14  ;;  %v2575_v13 = vld [vmem:[#allocation3 + $0x5a0] ss:$16 sps:$4 sm:$0xff]   ;;  %v2578_v14 = vld [vmem:[#allocation3 + $0x5a8] ss:$16 sps:$4 sm:$0xff]  }
  0x90   :  { %902 = vmatpush1.bf16.msra.mxu0 %v2490_v15  ;;  %984 = vmatpush1.bf16.msra.mxu1 %v2493_v16  ;;  %v2583_v15 = vld [vmem:[#allocation3 + $0x5c4] ss:$16 sps:$4 sm:$0xff]   ;;  %v2586_v16 = vld [vmem:[#allocation3 + $0x5cc] ss:$16 sps:$4 sm:$0xff]  }
  0x91   :  { %1820 = vmatprep.subr.bf16.mxu0 %v2499_v17  ;;  %1902 = vmatprep.subr.bf16.mxu1 %v2502_v18  ;;  %v1026_v17 = vcombine.high %v2777_v22, %v2777_v22  ;;  %v2581_v18 = vld [vmem:[#allocation3 + $0x5c0] ss:$16 sps:$4 sm:$0xff]  }
  0x93   :  { %904 = vmatmul.mubr.bf16.vlgmr.msra.gmra.mrb[0].mxu0 %v60_v19  ;;  %986 = vmatmul.mubr.bf16.vlgmr.msra.gmra.mrb[0].mxu1 %v60_v19  ;;  %v2584_v19 = vld [vmem:[#allocation3 + $0x5c8] ss:$16 sps:$4 sm:$0xff]  }
  0x94   :  { %1821 = vmatpush1.bf16.msra.mxu0 %v2497_v20  ;;  %1903 = vmatpush1.bf16.msra.mxu1 %v2500_v21  ;;  %v2589_v20 = vld [vmem:[#allocation3 + $0x5e4] ss:$16 sps:$4 sm:$0xff]   ;;  %v2592_v21 = vld [vmem:[#allocation3 + $0x5ec] ss:$16 sps:$4 sm:$0xff]  }
  0x95   :  { %1822 = vmatprep.subr.bf16.mxu0 %v2505_v23  ;;  %1904 = vmatprep.subr.bf16.mxu1 %v2508_v24  ;;  %v2788_v23 = vrot.slane %v1026_v17, %v2761_v49  ;;  %v2587_v24 = vld [vmem:[#allocation3 + $0x5e0] ss:$16 sps:$4 sm:$0xff]   ;;  %v2668_v17 = vld [vmem:[#allocation3 + $0x788] ss:$16 sps:$4 sm:$0xff]  }
  0x96   :  { %1852 = vmatprep.mubr.bf16.mxu0 %v1048_v30  ;;  %1934 = vmatprep.mubr.bf16.mxu1 %v1048_v30  ;;  %v2593_v30 = vld [vmem:[#allocation3 + $0x600] ss:$16 sps:$4 sm:$0xff]  }
  0x98   :  { %1823 = vmatpush1.bf16.msra.mxu0 %v2503_v26  ;;  %1905 = vmatpush1.bf16.msra.mxu1 %v2506_v27  ;;  %v2595_v26 = vld [vmem:[#allocation3 + $0x604] ss:$16 sps:$4 sm:$0xff]   ;;  %v2598_v27 = vld [vmem:[#allocation3 + $0x60c] ss:$16 sps:$4 sm:$0xff]  }
  0x99   :  { %1824 = vmatprep.subr.bf16.mxu0 %v2511_v28  ;;  %1906 = vmatprep.subr.bf16.mxu1 %v2514_v29  ;;  %v1042_v28 = vcombine.high %v2788_v23, %v2788_v23  ;;  %v1047_v29 = vpack.c.bf16 %v2781_v25, %v2781_v25  ;;  %v2605_v25 = vld [vmem:[#allocation3 + $0x640] ss:$16 sps:$4 sm:$0xff]  }
  0x9c   :  { %1825 = vmatpush1.bf16.msra.mxu0 %v2509_v31  ;;  %1907 = vmatpush1.bf16.msra.mxu1 %v2512_v32  ;;  %v2596_v31 = vld [vmem:[#allocation3 + $0x608] ss:$16 sps:$4 sm:$0xff]   ;;  %v2601_v32 = vld [vmem:[#allocation3 + $0x624] ss:$16 sps:$4 sm:$0xff]  }
  0x9d   :  { %1826 = vmatprep.subr.bf16.mxu0 %v2517_v33  ;;  %1908 = vmatprep.subr.bf16.mxu1 %v2520_v34  ;;  %v2604_v33 = vld [vmem:[#allocation3 + $0x62c] ss:$16 sps:$4 sm:$0xff]   ;;  %v1050_v34 = vpack.c.bf16 %v1042_v28, %v1042_v28  ;;  %v2685_v28 = vld [vmem:[#allocation3 + $0x7e4] ss:$16 sps:$4 sm:$0xff]  }
  0xa0   :  { %1827 = vmatpush1.bf16.msra.mxu0 %v2515_v35  ;;  %1909 = vmatpush1.bf16.msra.mxu1 %v2518_v36  ;;  %v2599_v35 = vld [vmem:[#allocation3 + $0x620] ss:$16 sps:$4 sm:$0xff]   ;;  %v2602_v36 = vld [vmem:[#allocation3 + $0x628] ss:$16 sps:$4 sm:$0xff]  }
  0xa1   :  { %1828 = vmatprep.subr.bf16.mxu0 %v2523_v37  ;;  %1910 = vmatprep.subr.bf16.mxu1 %v2526_v38  ;;  %v2607_v37 = vld [vmem:[#allocation3 + $0x644] ss:$16 sps:$4 sm:$0xff]   ;;  %v2610_v38 = vld [vmem:[#allocation3 + $0x64c] ss:$16 sps:$4 sm:$0xff]  }
  0xa4   :  { %1829 = vmatpush1.bf16.msra.mxu0 %v2521_v39  ;;  %1911 = vmatpush1.bf16.msra.mxu1 %v2524_v40  ;;  %v2608_v39 = vld [vmem:[#allocation3 + $0x648] ss:$16 sps:$4 sm:$0xff]   ;;  %v2613_v40 = vld [vmem:[#allocation3 + $0x664] ss:$16 sps:$4 sm:$0xff]  }
  0xa5   :  { %1830 = vmatprep.subr.bf16.mxu0 %v2529_v41  ;;  %1912 = vmatprep.subr.bf16.mxu1 %v2532_v42  ;;  %v2616_v41 = vld [vmem:[#allocation3 + $0x66c] ss:$16 sps:$4 sm:$0xff]   ;;  %v2611_v42 = vld [vmem:[#allocation3 + $0x660] ss:$16 sps:$4 sm:$0xff]  }
  0xa8   :  { %1831 = vmatpush1.bf16.msra.mxu0 %v2527_v43  ;;  %1913 = vmatpush1.bf16.msra.mxu1 %v2530_v44  ;;  %v2614_v43 = vld [vmem:[#allocation3 + $0x668] ss:$16 sps:$4 sm:$0xff]   ;;  %v2619_v44 = vld [vmem:[#allocation3 + $0x684] ss:$16 sps:$4 sm:$0xff]  }
  0xa9   :  { %1832 = vmatprep.subr.bf16.mxu0 %v2535_v45  ;;  %1914 = vmatprep.subr.bf16.mxu1 %v2538_v46  ;;  %v2622_v45 = vld [vmem:[#allocation3 + $0x68c] ss:$16 sps:$4 sm:$0xff]   ;;  %v2617_v46 = vld [vmem:[#allocation3 + $0x680] ss:$16 sps:$4 sm:$0xff]  }
  0xac   :  { %1833 = vmatpush1.bf16.msra.mxu0 %v2533_v47  ;;  %1915 = vmatpush1.bf16.msra.mxu1 %v2536_v48  ;;  %v2620_v47 = vld [vmem:[#allocation3 + $0x688] ss:$16 sps:$4 sm:$0xff]   ;;  %v2625_v48 = vld [vmem:[#allocation3 + $0x6a4] ss:$16 sps:$4 sm:$0xff]  }
  0xad   :  { %1834 = vmatprep.subr.bf16.mxu0 %v2541_v50  ;;  %1916 = vmatprep.subr.bf16.mxu1 %v2544_v51  ;;  %v2628_v50 = vld [vmem:[#allocation3 + $0x6ac] ss:$16 sps:$4 sm:$0xff]   ;;  %v2623_v51 = vld [vmem:[#allocation3 + $0x6a0] ss:$16 sps:$4 sm:$0xff]  }
  0xb0   :  { %1835 = vmatpush1.bf16.msra.mxu0 %v2539_v52  ;;  %1917 = vmatpush1.bf16.msra.mxu1 %v2542_v53  ;;  %v2626_v52 = vld [vmem:[#allocation3 + $0x6a8] ss:$16 sps:$4 sm:$0xff]   ;;  %v2631_v53 = vld [vmem:[#allocation3 + $0x6c4] ss:$16 sps:$4 sm:$0xff]  }
  0xb1   :  { %1836 = vmatprep.subr.bf16.mxu0 %v2547_v54  ;;  %1918 = vmatprep.subr.bf16.mxu1 %v2550_v55  ;;  %v2634_v54 = vld [vmem:[#allocation3 + $0x6cc] ss:$16 sps:$4 sm:$0xff]   ;;  %v2629_v55 = vld [vmem:[#allocation3 + $0x6c0] ss:$16 sps:$4 sm:$0xff]  }
  0xb4   :  { %1837 = vmatpush1.bf16.msra.mxu0 %v2545_v56  ;;  %1919 = vmatpush1.bf16.msra.mxu1 %v2548_v57  ;;  %v2632_v56 = vld [vmem:[#allocation3 + $0x6c8] ss:$16 sps:$4 sm:$0xff]   ;;  %v2637_v57 = vld [vmem:[#allocation3 + $0x6e4] ss:$16 sps:$4 sm:$0xff]  }
  0xb5   :  { %1838 = vmatprep.subr.bf16.mxu0 %v2553_v58  ;;  %1920 = vmatprep.subr.bf16.mxu1 %v2556_v59  ;;  %v2640_v58 = vld [vmem:[#allocation3 + $0x6ec] ss:$16 sps:$4 sm:$0xff]   ;;  %v2635_v59 = vld [vmem:[#allocation3 + $0x6e0] ss:$16 sps:$4 sm:$0xff]  }
  0xb8   :  { %1839 = vmatpush1.bf16.msra.mxu0 %v2551_v60  ;;  %1921 = vmatpush1.bf16.msra.mxu1 %v2554_v61  ;;  %v2638_v60 = vld [vmem:[#allocation3 + $0x6e8] ss:$16 sps:$4 sm:$0xff]   ;;  %v2643_v61 = vld [vmem:[#allocation3 + $0x704] ss:$16 sps:$4 sm:$0xff]  }
  0xb9   :  { %1840 = vmatprep.subr.bf16.mxu0 %v2559_v62  ;;  %1922 = vmatprep.subr.bf16.mxu1 %v2562_v63  ;;  %v2646_v62 = vld [vmem:[#allocation3 + $0x70c] ss:$16 sps:$4 sm:$0xff]   ;;  %v2641_v63 = vld [vmem:[#allocation3 + $0x700] ss:$16 sps:$4 sm:$0xff]  }
  0xbc   :  { %1841 = vmatpush1.bf16.msra.mxu0 %v2557_v0  ;;  %1923 = vmatpush1.bf16.msra.mxu1 %v2560_v1  ;;  %v2644_v0 = vld [vmem:[#allocation3 + $0x708] ss:$16 sps:$4 sm:$0xff]   ;;  %v2649_v1 = vld [vmem:[#allocation3 + $0x724] ss:$16 sps:$4 sm:$0xff]  }
  0xbd   :  { %1842 = vmatprep.subr.bf16.mxu0 %v2565_v2  ;;  %1924 = vmatprep.subr.bf16.mxu1 %v2568_v3  ;;  %v2652_v2 = vld [vmem:[#allocation3 + $0x72c] ss:$16 sps:$4 sm:$0xff]   ;;  %v2647_v3 = vld [vmem:[#allocation3 + $0x720] ss:$16 sps:$4 sm:$0xff]  }
  0xc0   :  { %1843 = vmatpush1.bf16.msra.mxu0 %v2563_v4  ;;  %1925 = vmatpush1.bf16.msra.mxu1 %v2566_v5  ;;  %v2650_v4 = vld [vmem:[#allocation3 + $0x728] ss:$16 sps:$4 sm:$0xff]   ;;  %v2655_v5 = vld [vmem:[#allocation3 + $0x744] ss:$16 sps:$4 sm:$0xff]  }
  0xc1   :  { %1844 = vmatprep.subr.bf16.mxu0 %v2571_v6  ;;  %1926 = vmatprep.subr.bf16.mxu1 %v2574_v7  ;;  %v2658_v6 = vld [vmem:[#allocation3 + $0x74c] ss:$16 sps:$4 sm:$0xff]   ;;  %v2653_v7 = vld [vmem:[#allocation3 + $0x740] ss:$16 sps:$4 sm:$0xff]  }
  0xc4   :  { %1845 = vmatpush1.bf16.msra.mxu0 %v2569_v8  ;;  %1927 = vmatpush1.bf16.msra.mxu1 %v2572_v10  ;;  %v2656_v8 = vld [vmem:[#allocation3 + $0x748] ss:$16 sps:$4 sm:$0xff]   ;;  %v2661_v10 = vld [vmem:[#allocation3 + $0x764] ss:$16 sps:$4 sm:$0xff]  }
  0xc5   :  { %1846 = vmatprep.subr.bf16.mxu0 %v2577_v11  ;;  %1928 = vmatprep.subr.bf16.mxu1 %v2580_v12  ;;  %v2664_v11 = vld [vmem:[#allocation3 + $0x76c] ss:$16 sps:$4 sm:$0xff]   ;;  %v2659_v12 = vld [vmem:[#allocation3 + $0x760] ss:$16 sps:$4 sm:$0xff]  }
  0xc8   :  { %1847 = vmatpush1.bf16.msra.mxu0 %v2575_v13  ;;  %1929 = vmatpush1.bf16.msra.mxu1 %v2578_v14  ;;  %v2662_v13 = vld [vmem:[#allocation3 + $0x768] ss:$16 sps:$4 sm:$0xff]   ;;  %v2667_v14 = vld [vmem:[#allocation3 + $0x784] ss:$16 sps:$4 sm:$0xff]  }
  0xc9   :  { %1848 = vmatprep.subr.bf16.mxu0 %v2583_v15  ;;  %1930 = vmatprep.subr.bf16.mxu1 %v2586_v16  ;;  %v2670_v15 = vld [vmem:[#allocation3 + $0x78c] ss:$16 sps:$4 sm:$0xff]   ;;  %v2665_v16 = vld [vmem:[#allocation3 + $0x780] ss:$16 sps:$4 sm:$0xff]  }
  0xcc   :  { %1849 = vmatpush1.bf16.msra.mxu0 %v2581_v18  ;;  %1931 = vmatpush1.bf16.msra.mxu1 %v2584_v19  ;;  %v2673_v18 = vld [vmem:[#allocation3 + $0x7a4] ss:$16 sps:$4 sm:$0xff]   ;;  %v2676_v19 = vld [vmem:[#allocation3 + $0x7ac] ss:$16 sps:$4 sm:$0xff]  }
  0xcd   :  { %1850 = vmatprep.subr.bf16.mxu0 %v2589_v20  ;;  %1932 = vmatprep.subr.bf16.mxu1 %v2592_v21  ;;  %v2671_v20 = vld [vmem:[#allocation3 + $0x7a0] ss:$16 sps:$4 sm:$0xff]   ;;  %v2674_v21 = vld [vmem:[#allocation3 + $0x7a8] ss:$16 sps:$4 sm:$0xff]  }
  0xd0   :  { %1851 = vmatpush1.bf16.msra.mxu0 %v2587_v24  ;;  %1933 = vmatpush1.bf16.msra.mxu1 %v2590_v9  ;;  %v2679_v24 = vld [vmem:[#allocation3 + $0x7c4] ss:$16 sps:$4 sm:$0xff]   ;;  %v2682_v9 = vld [vmem:[#allocation3 + $0x7cc] ss:$16 sps:$4 sm:$0xff]  }
  0xd1   :  { %1861 = vmatprep.subr.bf16.mxu0 %v2595_v26  ;;  %1943 = vmatprep.subr.bf16.mxu1 %v2598_v27  ;;  %v2677_v26 = vld [vmem:[#allocation3 + $0x7c0] ss:$16 sps:$4 sm:$0xff]   ;;  %v2680_v27 = vld [vmem:[#allocation3 + $0x7c8] ss:$16 sps:$4 sm:$0xff]  }
  0xd3   :  { %1853 = vmatmul.mubr.bf16.vlgmr.msra.gmra.mrb[4].mxu0 %v1047_v29  ;;  %1935 = vmatmul.mubr.bf16.vlgmr.msra.gmra.mrb[4].mxu1 %v1047_v29  ;;  %v2688_v29 = vld [vmem:[#allocation3 + $0x7ec] ss:$16 sps:$4 sm:$0xff]  }
  0xd4   :  { %1862 = vmatpush1.bf16.msra.mxu0 %v2593_v30  ;;  %1944 = vmatpush1.bf16.msra.mxu1 %v2596_v31  ;;  %v2683_v30 = vld [vmem:[#allocation3 + $0x7e0] ss:$16 sps:$4 sm:$0xff]   ;;  %v2686_v31 = vld [vmem:[#allocation3 + $0x7e8] ss:$16 sps:$4 sm:$0xff]  }
  0xd5   :  { %1863 = vmatprep.subr.bf16.mxu0 %v2601_v32  ;;  %1945 = vmatprep.subr.bf16.mxu1 %v2604_v33  ;;  %v1049_v32 = vpack.c.bf16 %v2788_v23, %v2788_v23  ;;  %v1017_v23 = vld [vmem:[%s2826_s1] sm:$0xff] }
  0xd6   :  { %1893 = vmatprep.mubr.bf16.mxu0 %v1050_v34  ;;  %1975 = vmatprep.mubr.bf16.mxu1 %v1050_v34 }
  0xd8   :  { %1864 = vmatpush1.bf16.msra.mxu0 %v2599_v35  ;;  %1946 = vmatpush1.bf16.msra.mxu1 %v2602_v36 }
  0xd9   :  { %1865 = vmatprep.subr.bf16.mxu0 %v2607_v37  ;;  %1947 = vmatprep.subr.bf16.mxu1 %v2610_v38 }
  0xdc   :  { %1866 = vmatpush1.bf16.msra.mxu0 %v2605_v25  ;;  %1948 = vmatpush1.bf16.msra.mxu1 %v2608_v39 }
  0xdd   :  { %1867 = vmatprep.subr.bf16.mxu0 %v2613_v40  ;;  %1949 = vmatprep.subr.bf16.mxu1 %v2616_v41 }
  0xe0   :  { %1868 = vmatpush1.bf16.msra.mxu0 %v2611_v42  ;;  %1950 = vmatpush1.bf16.msra.mxu1 %v2614_v43 }
  0xe1   :  { %1869 = vmatprep.subr.bf16.mxu0 %v2619_v44  ;;  %1951 = vmatprep.subr.bf16.mxu1 %v2622_v45  ;;  %v1019_v45 = vstv %s2828_s3 }
  0xe4   :  { %1870 = vmatpush1.bf16.msra.mxu0 %v2617_v46  ;;  %1952 = vmatpush1.bf16.msra.mxu1 %v2620_v47 }
  0xe5   :  { %1871 = vmatprep.subr.bf16.mxu0 %v2625_v48  ;;  %1953 = vmatprep.subr.bf16.mxu1 %v2628_v50  ;;  %v2690_v48 = vld [vmem:[%s2825_s0] sm:$0xff] }
  0xe8   :  { %1872 = vmatpush1.bf16.msra.mxu0 %v2623_v51  ;;  %1954 = vmatpush1.bf16.msra.mxu1 %v2626_v52 }
  0xe9   :  { %1873 = vmatprep.subr.bf16.mxu0 %v2631_v53  ;;  %1955 = vmatprep.subr.bf16.mxu1 %v2634_v54 }
  0xec   :  { %1874 = vmatpush1.bf16.msra.mxu0 %v2629_v55  ;;  %1956 = vmatpush1.bf16.msra.mxu1 %v2632_v56 }
  0xed   :  { %1875 = vmatprep.subr.bf16.mxu0 %v2637_v57  ;;  %1957 = vmatprep.subr.bf16.mxu1 %v2640_v58 }
  0xf0   :  { %1876 = vmatpush1.bf16.msra.mxu0 %v2635_v59  ;;  %1958 = vmatpush1.bf16.msra.mxu1 %v2638_v60 }
  0xf1   :  { %1877 = vmatprep.subr.bf16.mxu0 %v2643_v61  ;;  %1959 = vmatprep.subr.bf16.mxu1 %v2646_v62 }
  0xf4   :  { %1878 = vmatpush1.bf16.msra.mxu0 %v2641_v63  ;;  %1960 = vmatpush1.bf16.msra.mxu1 %v2644_v0  ;;  %v2282_v63 = vld [vmem:[%s2826_s1 + $0x8] sm:$0xff] }
  0xf5   :  { %1879 = vmatprep.subr.bf16.mxu0 %v2649_v1  ;;  %1961 = vmatprep.subr.bf16.mxu1 %v2652_v2 }
  0xf8   :  { %1880 = vmatpush1.bf16.msra.mxu0 %v2647_v3  ;;  %1962 = vmatpush1.bf16.msra.mxu1 %v2650_v4 }
  0xf9   :  { %1881 = vmatprep.subr.bf16.mxu0 %v2655_v5  ;;  %1963 = vmatprep.subr.bf16.mxu1 %v2658_v6 }
  0xfc   :  { %1882 = vmatpush1.bf16.msra.mxu0 %v2653_v7  ;;  %1964 = vmatpush1.bf16.msra.mxu1 %v2656_v8 }
  0xfd   :  { %1883 = vmatprep.subr.bf16.mxu0 %v2661_v10  ;;  %1965 = vmatprep.subr.bf16.mxu1 %v2664_v11 }
 0x100   :  { %1884 = vmatpush1.bf16.msra.mxu0 %v2659_v12  ;;  %1966 = vmatpush1.bf16.msra.mxu1 %v2662_v13 }
 0x101   :  { %1885 = vmatprep.subr.bf16.mxu0 %v2667_v14  ;;  %1967 = vmatprep.subr.bf16.mxu1 %v2670_v15 }
 0x104   :  { %1886 = vmatpush1.bf16.msra.mxu0 %v2665_v16  ;;  %1968 = vmatpush1.bf16.msra.mxu1 %v2668_v17 }
 0x105   :  { %1887 = vmatprep.subr.bf16.mxu0 %v2673_v18  ;;  %1969 = vmatprep.subr.bf16.mxu1 %v2676_v19 }
 0x108   :  { %1888 = vmatpush1.bf16.msra.mxu0 %v2671_v20  ;;  %1970 = vmatpush1.bf16.msra.mxu1 %v2674_v21 }
 0x109   :  { %1889 = vmatprep.subr.bf16.mxu0 %v2679_v24  ;;  %1971 = vmatprep.subr.bf16.mxu1 %v2682_v9 }
 0x10c   :  { %1890 = vmatpush1.bf16.msra.mxu0 %v2677_v26  ;;  %1972 = vmatpush1.bf16.msra.mxu1 %v2680_v27 }
 0x10d   :  { %1891 = vmatprep.subr.bf16.mxu0 %v2685_v28  ;;  %1973 = vmatprep.subr.bf16.mxu1 %v2688_v29 }
 0x110   :  { %1892 = vmatpush1.bf16.msra.mxu0 %v2683_v30  ;;  %1974 = vmatpush1.bf16.msra.mxu1 %v2686_v31 }
 0x113   :  { %1894 = vmatmul.mubr.bf16.vlgmr.msra.gmra.mrb[4].mxu0 %v1049_v32  ;;  %1976 = vmatmul.mubr.bf16.vlgmr.msra.gmra.mrb[4].mxu1 %v1049_v32 }
 0x166   :  { %v905_v33 = vpop.f32.mrb[0].mxu0  ;;  %v987_v34 = vpop.f32.mrb[0].mxu1 }
 0x167   :  { %v907_v35 = vpop.f32.mrb[1].mxu0  ;;  %v989_v36 = vpop.f32.mrb[1].mxu1 }
 0x168   :  { %v998_v37 = vcombine.low %v905_v33, %v907_v35  ;;  %v999_v38 = vcombine.low %v987_v34, %v989_v36  ;;  %v909_v25 = vpop.f32.mrb[2].mxu0  ;;  %v991_v39 = vpop.f32.mrb[2].mxu1 }
 0x169   :  { %v910_v40 = vpop.f32.mrb[3].mxu0  ;;  %v992_v41 = vpop.f32.mrb[3].mxu1 }
 0x16a   :  { %v1006_v42 = vrot.slane %v998_v37, %v2761_v49  ;;  %v1013_v43 = vrot.slane %v999_v38, %v2761_v49 }
 0x16c   :  { %v1014_v44 = vcombine.low %v1006_v42, %v1013_v43 }
 0x16e   :  { %1016 = vst [vmem:[%s2830_s5] sm:$0xff] %v1014_v44  ;;  %v1018_v46 = vsub.f32 %v1017_v23, %v1014_v44 }
 0x170   :  { %v1020_v47 = vmul.f32 %v1019_v45, %v1018_v46 }
 0x172   :  { %v1021_v50 = vadd.f32 %v2690_v48, %v1020_v47 }
 0x174   :  { %1022 = vst [vmem:[%s2829_s4] sm:$0xff] %v1021_v50 }
 0x1e6   :  { %v1895_v51 = vpop.f32.mrb[4].mxu0  ;;  %v1977_v52 = vpop.f32.mrb[4].mxu1 }
 0x1e7   :  { %v1897_v53 = vpop.f32.mrb[5].mxu0  ;;  %v1979_v54 = vpop.f32.mrb[5].mxu1 }
 0x1e8   :  { %v1988_v55 = vcombine.low %v1895_v51, %v1897_v53  ;;  %v1989_v56 = vcombine.low %v1977_v52, %v1979_v54  ;;  %v1899_v57 = vpop.f32.mrb[6].mxu0  ;;  %v1981_v58 = vpop.f32.mrb[6].mxu1 }
 0x1e9   :  { %v1900_v59 = vpop.f32.mrb[7].mxu0  ;;  %v1982_v60 = vpop.f32.mrb[7].mxu1 }
 0x1ea   :  { %v1996_v61 = vrot.slane %v1988_v55, %v2761_v49  ;;  %v2003_v62 = vrot.slane %v1989_v56, %v2761_v49 }
 0x1ec   :  { %v2004_v0 = vcombine.low %v1996_v61, %v2003_v62 }
 0x1ee   :  { %2281 = vst [vmem:[%s2830_s5 + $0x8] sm:$0xff] %v2004_v0  ;;  %v2010_v1 = vsub.f32 %v2282_v63, %v2004_v0 }
 0x1f0   :  { %v2011_v2 = vmul.f32 %v2010_v1, %v1019_v45 }
 0x1f2   :  { %v2012_v3 = vadd.f32 %v2777_v22, %v2011_v2 }
 0x1f4   :  { %2283 = vst [vmem:[%s2829_s4 + $0x8] sm:$0xff] %v2012_v3 }
 0x1f5   :  { %2023 = vsyncpa [#allocation4], 1 }

</bundles_post_ra>
